<compile_context>
chip_gen: v6e
topology: v6e:2x2x1
jax: 0.10.0
libtpu: 0.0.40
codegen_flags: <defaults>
</compile_context>

<pallas_src>
import numpy as np
import jax
import jax.numpy as jnp
from jax import lax
from jax.experimental import pallas as pl
from jax.experimental.pallas import tpu as pltpu

EPS = 1e-5


# ----------------------------------- kernel ----------------------------------

def lidar_encoder_kernel(x_ref, w1_ref, s1_ref, w2_ref, s2_ref, w3_ref, s3_ref,
                         wf_ref, fb_ref, out_ref):
    """4 MXU matmuls (bf16 operands, f32 accumulation) + 3 pair-max pools + ReLUs.

    Pair-max leaves garbage in odd lanes (and in the lane that wraps across a
    channel / slab boundary); those lanes always multiply all-zero rows of the
    next folded weight, so they never contribute to the output."""

    def conv_bn_relu(h, w_ref, s_ref):
        y = jnp.dot(h.astype(jnp.bfloat16), w_ref[...],
                    preferred_element_type=jnp.float32)
        return jnp.maximum(y + s_ref[...], 0.0)        # BN shift + ReLU (f32 VPU)

    def pair_max(h):                                    # MaxPool1d(2) pair-max
        n = h.shape[1]
        return jnp.maximum(h, pltpu.roll(h, shift=n - 1, axis=1))

    h = conv_bn_relu(x_ref[...], w1_ref, s1_ref)        # (TB, 2L)
    h = pair_max(h)
    h = conv_bn_relu(h, w2_ref, s2_ref)                 # (TB, 2L)
    h = pair_max(h)
    h = conv_bn_relu(h, w3_ref, s3_ref)                 # (TB, 2L)
    h = pair_max(h)
    out = jnp.dot(h.astype(jnp.bfloat16), wf_ref[...],  # pool3 + flatten + FC
                  preferred_element_type=jnp.float32)   # (TB, Fp)
    out_ref[...] = jnp.maximum(out + fb_ref[...], 0.0)


# --------------------------- host-side weight folding -------------------------

def _bn_fold(p, li):
    scale = np.asarray(p[f"gamma{li}"], np.float32) / np.sqrt(
        np.asarray(p[f"var{li}"], np.float32) + EPS)
    shift = np.asarray(p[f"beta{li}"], np.float32) - \
        np.asarray(p[f"mean{li}"], np.float32) * scale
    return scale, shift


def _conv_toeplitz(w, scale, lanes_in, stride_in):
    """Banded matrix for Conv1d(k=3, s=1, p=1) acting on a lane-concatenated slab.

    Input channel i occupies `lanes_in` lanes; valid (post-pool) samples sit at
    lane offsets m*stride_in.  BN scale is folded in.  Rows for unused lanes stay
    zero, absorbing the pair-max garbage of the previous pool."""
    w = np.asarray(w, np.float32) * scale[:, None, None]
    cout, cin, K = w.shape
    lout = lanes_in // stride_in
    mat = np.zeros((cin * lanes_in, cout * lout), np.float32)
    for o in range(cout):
        for i in range(cin):
            for k in range(K):
                for l in range(lout):
                    m = l + k - 1                          # padding = 1
                    if 0 <= m < lout:
                        mat[i * lanes_in + m * stride_in, o * lout + l] = w[o, i, k]
    return mat


# ----------------------------------- wrapper ----------------------------------

def lidar_encoder(x, p):
    B, L = x.shape
    assert L % 8 == 0
    F = int(p["fc_w"].shape[0])
    Bp = ((B + 7) // 8) * 8                     # full sublanes
    Fp = max(((F + 127) // 128) * 128, 128)     # lane-dense output store

    # Fold BN scale + pool even-lane selection into the matmul weights.
    sc1, sh1 = _bn_fold(p, 1)
    sc2, sh2 = _bn_fold(p, 2)
    sc3, sh3 = _bn_fold(p, 3)
    W1 = _conv_toeplitz(p["w1"], sc1, L, 1)         # (L,  2L)
    W2 = _conv_toeplitz(p["w2"], sc2, L, 2)         # (2L, 2L)
    W3 = _conv_toeplitz(p["w3"], sc3, L // 2, 2)    # (2L, 2L)
    s1 = np.repeat(sh1, L)[None, :]                 # per-channel BN shift, lane-broadcast
    s2 = np.repeat(sh2, L // 2)[None, :]
    s3 = np.repeat(sh3, L // 4)[None, :]

    # MaxPool3 + channel-major flatten + FC folded into one weight (odd rows and
    # columns >= F are zero).
    L4 = L // 4
    Wf = np.zeros((8 * L4, Fp), np.float32)
    Wf[0::2, :F] = np.asarray(p["fc_w"], np.float32).T
    fb = np.zeros((1, Fp), np.float32)
    fb[0, :F] = np.asarray(p["fc_b"], np.float32)

    # bf16 MXU operands; f32 for everything the VPU touches.
    w1, w2, w3, wf = (jnp.asarray(a, jnp.bfloat16) for a in (W1, W2, W3, Wf))
    s1, s2, s3, fb = (jnp.asarray(a, jnp.float32) for a in (s1, s2, s3, fb))

    xp = jnp.pad(x.astype(jnp.float32), ((0, Bp - B), (0, 0)))

    # Batch tile: whole padded batch at small B; capped block for very large B so
    # double-buffered blocks stay comfortable in v7x's 64 MiB VMEM.
    TB = Bp if Bp <= 512 else next(t for t in (512, 256, 128, 64, 32, 16, 8)
                                   if Bp % t == 0)
    grid = (Bp // TB,)

    def fixed(shape):                         # weights: same (only) block each step
        return pl.BlockSpec(shape, lambda i: (0, 0))

    out = pl.pallas_call(
        lidar_encoder_kernel,
        out_shape=jax.ShapeDtypeStruct((Bp, Fp), jnp.float32),
        grid=grid,
        in_specs=[pl.BlockSpec((TB, L), lambda i: (i, 0)),
                  fixed(W1.shape), fixed(s1.shape),
                  fixed(W2.shape), fixed(s2.shape),
                  fixed(W3.shape), fixed(s3.shape),
                  fixed(Wf.shape), fixed(fb.shape)],
        out_specs=pl.BlockSpec((TB, Fp), lambda i: (i, 0)),
        compiler_params=pltpu.CompilerParams(dimension_semantics=("parallel",)),
    )(xp, w1, s1, w2, s2, w3, s3, wf, fb)
    return out[:B, :F]


# --------------------------- deterministic parameters --------------------------

def make_params(lidar_delta, feature_dim):
    key = jax.random.PRNGKey(0)
    ks = iter(jax.random.split(key, 32))
    p = {}
    for li, (cin, cout) in enumerate([(1, 2), (2, 4), (4, 8)], start=1):
        p[f"w{li}"] = 0.5 * jax.random.normal(next(ks), (cout, cin, 3), jnp.float32)
        p[f"gamma{li}"] = jax.random.uniform(next(ks), (cout,), jnp.float32, 0.5, 1.5)
        p[f"beta{li}"] = 0.1 * jax.random.normal(next(ks), (cout,), jnp.float32)
        p[f"mean{li}"] = 0.1 * jax.random.normal(next(ks), (cout,), jnp.float32)
        p[f"var{li}"] = jax.random.uniform(next(ks), (cout,), jnp.float32, 0.5, 1.5)
    flat = (lidar_delta // 2 ** 3) * 8
    p["fc_w"] = jax.random.normal(next(ks), (feature_dim, flat), jnp.float32) / np.sqrt(flat)
    p["fc_b"] = 0.1 * jax.random.normal(next(ks), (feature_dim,), jnp.float32)
    return p


# -------------------------------- pure-JAX reference ---------------------------

def reference_forward(x, p):
    def conv1d(a, w):
        return lax.conv_general_dilated(a, w, window_strides=(1,), padding=((1, 1),),
                                        dimension_numbers=("NCH", "OIH", "NCH"))
    h = x[:, None, :]
    for li in (1, 2, 3):
        h = conv1d(h, p[f"w{li}"])
        scale = (p[f"gamma{li}"] / jnp.sqrt(p[f"var{li}"] + EPS))[None, :, None]
        shift = (p[f"beta{li}"] - p[f"mean{li}"] *
                 (p[f"gamma{li}"] / jnp.sqrt(p[f"var{li}"] + EPS)))[None, :, None]
        h = jnp.maximum(h * scale + shift, 0.0)
        B, C, Lc = h.shape
        h = h.reshape(B, C, Lc // 2, 2).max(axis=-1)
    flat = h.reshape(h.shape[0], -1)
    return jnp.maximum(flat @ p["fc_w"].T + p["fc_b"], 0.0)


if __name__ == "__main__":
    B, lidar_delta, feature_dim = 4, 64, 32      # small shapes; lidar_delta % 8 == 0
    x = jax.random.normal(jax.random.fold_in(jax.random.PRNGKey(0), 123),
                          (B, lidar_delta), jnp.float32)
    params = make_params(lidar_delta, feature_dim)

    out = jax.block_until_ready(lidar_encoder(x, params))
    ref = jax.block_until_ready(reference_forward(x, params))
    np.testing.assert_allclose(np.asarray(out), np.asarray(ref), rtol=3e-2, atol=3e-2)
    assert out.shape == (B, feature_dim)
    print("KERNEL_OK")
</pallas_src>

<mosaic_0001>
module attributes {stable_mosaic.version = 11 : i64} {
  func.func @lidar_encoder_kernel(%arg0: i32, %arg1: memref<8x64xf32, #tpu.memory_space<vmem>>, %arg2: memref<64x128xbf16, #tpu.memory_space<vmem>>, %arg3: memref<1x128xf32, #tpu.memory_space<vmem>>, %arg4: memref<128x128xbf16, #tpu.memory_space<vmem>>, %arg5: memref<1x128xf32, #tpu.memory_space<vmem>>, %arg6: memref<128x128xbf16, #tpu.memory_space<vmem>>, %arg7: memref<1x128xf32, #tpu.memory_space<vmem>>, %arg8: memref<128x128xbf16, #tpu.memory_space<vmem>>, %arg9: memref<1x128xf32, #tpu.memory_space<vmem>>, %arg10: memref<8x128xf32, #tpu.memory_space<vmem>>) attributes {dimension_semantics = [#tpu.dimension_semantics<parallel>], iteration_bounds = array<i64: 1>, scalar_prefetch = 0 : i64, scratch_operands = 0 : i64, tpu.core_type = #tpu.core_type<tc>, window_params = [{transform_indices = @transform_0, window_bounds = array<i64: 8, 64>}, {pipeline_mode = #tpu.pipeline_mode<synchronous>, transform_indices = @transform_1, window_bounds = array<i64: 64, 128>}, {pipeline_mode = #tpu.pipeline_mode<synchronous>, transform_indices = @transform_2, window_bounds = array<i64: 1, 128>}, {pipeline_mode = #tpu.pipeline_mode<synchronous>, transform_indices = @transform_3, window_bounds = array<i64: 128, 128>}, {pipeline_mode = #tpu.pipeline_mode<synchronous>, transform_indices = @transform_4, window_bounds = array<i64: 1, 128>}, {pipeline_mode = #tpu.pipeline_mode<synchronous>, transform_indices = @transform_5, window_bounds = array<i64: 128, 128>}, {pipeline_mode = #tpu.pipeline_mode<synchronous>, transform_indices = @transform_6, window_bounds = array<i64: 1, 128>}, {pipeline_mode = #tpu.pipeline_mode<synchronous>, transform_indices = @transform_7, window_bounds = array<i64: 128, 128>}, {pipeline_mode = #tpu.pipeline_mode<synchronous>, transform_indices = @transform_8, window_bounds = array<i64: 1, 128>}, {transform_indices = @transform_9, window_bounds = array<i64: 8, 128>}]} {
    %c0 = arith.constant 0 : index
    %c0_0 = arith.constant 0 : index
    %0 = vector.load %arg1[%c0, %c0_0] : memref<8x64xf32, #tpu.memory_space<vmem>>, vector<8x64xf32>
    %1 = arith.truncf %0 : vector<8x64xf32> to vector<8x64xbf16>
    %c0_1 = arith.constant 0 : index
    %c0_2 = arith.constant 0 : index
    %2 = vector.load %arg2[%c0_1, %c0_2] : memref<64x128xbf16, #tpu.memory_space<vmem>>, vector<64x128xbf16>
    %cst = arith.constant dense<0.000000e+00> : vector<8x128xf32>
    %3 = tpu.matmul %1, %2, %cst {dimension_numbers = #tpu.dot_dimension_numbers<[1], [0], [0], [1], [0, 0, 1, 1], [], []>} : vector<8x64xbf16>, vector<64x128xbf16>, vector<8x128xf32> -> vector<8x128xf32>
    %c0_3 = arith.constant 0 : index
    %c0_4 = arith.constant 0 : index
    %4 = vector.load %arg3[%c0_3, %c0_4] : memref<1x128xf32, #tpu.memory_space<vmem>>, vector<1x128xf32>
    %5 = vector.broadcast %4 : vector<1x128xf32> to vector<8x128xf32>
    %6 = arith.addf %3, %5 : vector<8x128xf32>
    %cst_5 = arith.constant 0.000000e+00 : f32
    %7 = vector.broadcast %cst_5 : f32 to vector<8x128xf32>
    %8 = arith.maximumf %6, %7 : vector<8x128xf32>
    %c127_i32 = arith.constant 127 : i32
    %9 = tpu.dynamic_rotate %8 by %c127_i32 dim 1 : vector<8x128xf32>, i32 -> vector<8x128xf32>
    %10 = arith.maximumf %8, %9 : vector<8x128xf32>
    %11 = arith.truncf %10 : vector<8x128xf32> to vector<8x128xbf16>
    %c0_6 = arith.constant 0 : index
    %c0_7 = arith.constant 0 : index
    %12 = vector.load %arg4[%c0_6, %c0_7] : memref<128x128xbf16, #tpu.memory_space<vmem>>, vector<128x128xbf16>
    %cst_8 = arith.constant dense<0.000000e+00> : vector<8x128xf32>
    %13 = tpu.matmul %11, %12, %cst_8 {dimension_numbers = #tpu.dot_dimension_numbers<[1], [0], [0], [1], [0, 0, 1, 1], [], []>} : vector<8x128xbf16>, vector<128x128xbf16>, vector<8x128xf32> -> vector<8x128xf32>
    %c0_9 = arith.constant 0 : index
    %c0_10 = arith.constant 0 : index
    %14 = vector.load %arg5[%c0_9, %c0_10] : memref<1x128xf32, #tpu.memory_space<vmem>>, vector<1x128xf32>
    %15 = vector.broadcast %14 : vector<1x128xf32> to vector<8x128xf32>
    %16 = arith.addf %13, %15 : vector<8x128xf32>
    %cst_11 = arith.constant 0.000000e+00 : f32
    %17 = vector.broadcast %cst_11 : f32 to vector<8x128xf32>
    %18 = arith.maximumf %16, %17 : vector<8x128xf32>
    %c127_i32_12 = arith.constant 127 : i32
    %19 = tpu.dynamic_rotate %18 by %c127_i32_12 dim 1 : vector<8x128xf32>, i32 -> vector<8x128xf32>
    %20 = arith.maximumf %18, %19 : vector<8x128xf32>
    %21 = arith.truncf %20 : vector<8x128xf32> to vector<8x128xbf16>
    %c0_13 = arith.constant 0 : index
    %c0_14 = arith.constant 0 : index
    %22 = vector.load %arg6[%c0_13, %c0_14] : memref<128x128xbf16, #tpu.memory_space<vmem>>, vector<128x128xbf16>
    %cst_15 = arith.constant dense<0.000000e+00> : vector<8x128xf32>
    %23 = tpu.matmul %21, %22, %cst_15 {dimension_numbers = #tpu.dot_dimension_numbers<[1], [0], [0], [1], [0, 0, 1, 1], [], []>} : vector<8x128xbf16>, vector<128x128xbf16>, vector<8x128xf32> -> vector<8x128xf32>
    %c0_16 = arith.constant 0 : index
    %c0_17 = arith.constant 0 : index
    %24 = vector.load %arg7[%c0_16, %c0_17] : memref<1x128xf32, #tpu.memory_space<vmem>>, vector<1x128xf32>
    %25 = vector.broadcast %24 : vector<1x128xf32> to vector<8x128xf32>
    %26 = arith.addf %23, %25 : vector<8x128xf32>
    %cst_18 = arith.constant 0.000000e+00 : f32
    %27 = vector.broadcast %cst_18 : f32 to vector<8x128xf32>
    %28 = arith.maximumf %26, %27 : vector<8x128xf32>
    %c127_i32_19 = arith.constant 127 : i32
    %29 = tpu.dynamic_rotate %28 by %c127_i32_19 dim 1 : vector<8x128xf32>, i32 -> vector<8x128xf32>
    %30 = arith.maximumf %28, %29 : vector<8x128xf32>
    %31 = arith.truncf %30 : vector<8x128xf32> to vector<8x128xbf16>
    %c0_20 = arith.constant 0 : index
    %c0_21 = arith.constant 0 : index
    %32 = vector.load %arg8[%c0_20, %c0_21] : memref<128x128xbf16, #tpu.memory_space<vmem>>, vector<128x128xbf16>
    %cst_22 = arith.constant dense<0.000000e+00> : vector<8x128xf32>
    %33 = tpu.matmul %31, %32, %cst_22 {dimension_numbers = #tpu.dot_dimension_numbers<[1], [0], [0], [1], [0, 0, 1, 1], [], []>} : vector<8x128xbf16>, vector<128x128xbf16>, vector<8x128xf32> -> vector<8x128xf32>
    %c0_23 = arith.constant 0 : index
    %c0_24 = arith.constant 0 : index
    %34 = vector.load %arg9[%c0_23, %c0_24] : memref<1x128xf32, #tpu.memory_space<vmem>>, vector<1x128xf32>
    %35 = vector.broadcast %34 : vector<1x128xf32> to vector<8x128xf32>
    %36 = arith.addf %33, %35 : vector<8x128xf32>
    %cst_25 = arith.constant 0.000000e+00 : f32
    %37 = vector.broadcast %cst_25 : f32 to vector<8x128xf32>
    %38 = arith.maximumf %36, %37 : vector<8x128xf32>
    %c0_26 = arith.constant 0 : index
    %c0_27 = arith.constant 0 : index
    %39 = vector.load %arg10[%c0_26, %c0_27] : memref<8x128xf32, #tpu.memory_space<vmem>>, vector<8x128xf32>
    tpu.vector_store %arg10[%c0_26, %c0_27], %38 {strides = array<i32>} : memref<8x128xf32, #tpu.memory_space<vmem>>, vector<8x128xf32>,
    return
  }
  func.func @transform_0(%arg0: i32) -> (i32, i32) {
    %c0_i32 = arith.constant 0 : i32
    %c0_i32_0 = arith.constant 0 : i32
    return %arg0, %c0_i32 : i32, i32
  }
  func.func @transform_1(%arg0: i32) -> (i32, i32) {
    %c0_i32 = arith.constant 0 : i32
    %c0_i32_0 = arith.constant 0 : i32
    %c0_i32_1 = arith.constant 0 : i32
    return %c0_i32, %c0_i32_0 : i32, i32
  }
  func.func @transform_2(%arg0: i32) -> (i32, i32) {
    %c0_i32 = arith.constant 0 : i32
    %c0_i32_0 = arith.constant 0 : i32
    %c0_i32_1 = arith.constant 0 : i32
    return %c0_i32, %c0_i32_0 : i32, i32
  }
  func.func @transform_3(%arg0: i32) -> (i32, i32) {
    %c0_i32 = arith.constant 0 : i32
    %c0_i32_0 = arith.constant 0 : i32
    %c0_i32_1 = arith.constant 0 : i32
    return %c0_i32, %c0_i32_0 : i32, i32
  }
  func.func @transform_4(%arg0: i32) -> (i32, i32) {
    %c0_i32 = arith.constant 0 : i32
    %c0_i32_0 = arith.constant 0 : i32
    %c0_i32_1 = arith.constant 0 : i32
    return %c0_i32, %c0_i32_0 : i32, i32
  }
  func.func @transform_5(%arg0: i32) -> (i32, i32) {
    %c0_i32 = arith.constant 0 : i32
    %c0_i32_0 = arith.constant 0 : i32
    %c0_i32_1 = arith.constant 0 : i32
    return %c0_i32, %c0_i32_0 : i32, i32
  }
  func.func @transform_6(%arg0: i32) -> (i32, i32) {
    %c0_i32 = arith.constant 0 : i32
    %c0_i32_0 = arith.constant 0 : i32
    %c0_i32_1 = arith.constant 0 : i32
    return %c0_i32, %c0_i32_0 : i32, i32
  }
  func.func @transform_7(%arg0: i32) -> (i32, i32) {
    %c0_i32 = arith.constant 0 : i32
    %c0_i32_0 = arith.constant 0 : i32
    %c0_i32_1 = arith.constant 0 : i32
    return %c0_i32, %c0_i32_0 : i32, i32
  }
  func.func @transform_8(%arg0: i32) -> (i32, i32) {
    %c0_i32 = arith.constant 0 : i32
    %c0_i32_0 = arith.constant 0 : i32
    %c0_i32_1 = arith.constant 0 : i32
    return %c0_i32, %c0_i32_0 : i32, i32
  }
  func.func @transform_9(%arg0: i32) -> (i32, i32) {
    %c0_i32 = arith.constant 0 : i32
    %c0_i32_0 = arith.constant 0 : i32
    return %arg0, %c0_i32 : i32, i32
  }
}

</mosaic_0001>

<bundles_post_ra>
// kernel: tpu_custom_call.1
= control target key start
LH: loop header
LB: loop body
LE: loop exit
PB: predicated region body
PF: predicated region fallthrough
CT: control target
= control target key end

     0   :  { %14 = vsyncpa [#allocation3], 0  ;;  %s998_s0 = inlined_call_operand.hbm [shape: f32[8,64], index: 0, kind: input, shape index: {}]   ;;  %s999_s1 = inlined_call_operand.hbm [shape: bf16[64,128], index: 1, kind: input, shape index: {}]   ;;  %s1000_s2 = inlined_call_operand.vmem [shape: f32[1,128], index: 2, kind: input, shape index: {}]   ;;  %s1001_s3 = inlined_call_operand.hbm [shape: bf16[128,128], index: 3, kind: input, shape index: {}]   ;;  %s1002_s4 = inlined_call_operand.vmem [shape: f32[1,128], index: 4, kind: input, shape index: {}]   ;;  %s1003_s5 = inlined_call_operand.hbm [shape: bf16[128,128], index: 5, kind: input, shape index: {}]   ;;  %s1004_s6 = inlined_call_operand.vmem [shape: f32[1,128], index: 6, kind: input, shape index: {}]   ;;  %s1005_s7 = inlined_call_operand.hbm [shape: bf16[128,128], index: 7, kind: input, shape index: {}]   ;;  %s1006_s8 = inlined_call_operand.vmem [shape: f32[1,128], index: 8, kind: input, shape index: {}]   ;;  %s1007_s9 = inlined_call_operand.hbm [shape: f32[8,128], index: 9, kind: output, shape index: {}]  }
   0x1   :  { %15 = vsyncpa [#allocation6], 0 }
   0x2   :  { %16 = vsyncpa [#allocation9], 0 }
   0x3   :  { %17 = vsyncpa [#allocation4], 0  ;;  %s856_s30 = smov [#allocation5]  }
   0x4   :  { %s33_s10 = sshll.u32 %s856_s30, 4  ;;  %s34_s10 = int_to_ptr.vmem [resolvable:$true] %s33_s10 }
   0x5   :  { %s736_s11 = scalar_lea.vmem %s34_s10, 512  ;;  %p741_p1 = scmp.lt.s32.totalorder %s34_s10, %s34_s10 }
   0x6   :  { %p737_p0 = scmp.ne.s32.totalorder %s34_s10, %s736_s11  ;;  %p742_p2 = scmp.lt.s32.totalorder %s736_s11, %s736_s11 }
   0x8   :  { %p743_p3 = por %p742_p2, %p741_p1 }
   0xa   :  { %p744_p4 = pnand %p743_p3, %p737_p0 }
   0xc   :  { %747 = shalt.err (!%p744_p4)
}
   0xd   :  { %s857_s12 = smov 64   ;;  %s858_s13 = smov 4  }
   0xe   :  { %39 = dma.hbm_to_vmem [thread:$0]  %s999_s1, 512, %s34_s10, [#allocation6], %s857_s12, %s857_s12, %s858_s13  }
   0xf   :  { %s859_s16 = smov [#allocation8]   ;;  %s860_s18 = smov [#allocation2]  }
  0x10   :  { %s61_s17 = sshll.u32 %s859_s16, 4  ;;  %s24_s19 = sshll.u32 %s860_s18, 4  ;;  %s62_s17 = int_to_ptr.vmem [resolvable:$true] %s61_s17  ;;  %s25_s19 = int_to_ptr.vmem [resolvable:$true] %s24_s19 }
  0x11   :  { %s756_s20 = scalar_lea.vmem %s62_s17, 1024  ;;  %p761_p6 = scmp.lt.s32.totalorder %s62_s17, %s62_s17 }
  0x12   :  { %p757_p5 = scmp.ne.s32.totalorder %s62_s17, %s756_s20  ;;  %p762_p7 = scmp.lt.s32.totalorder %s756_s20, %s756_s20 }
  0x14   :  { %p763_p8 = por %p762_p7, %p761_p6 }
  0x16   :  { %p764_p9 = pnand %p763_p8, %p757_p5 }
  0x18   :  { %767 = shalt.err (!%p764_p9)
}
  0x19   :  { %67 = dma.hbm_to_vmem [thread:$0]  %s1003_s5, 1024, %s62_s17, [#allocation9], %s857_s12, %s857_s12, %s858_s13  }
  0x1a   :  { %s776_s1 = scalar_lea.vmem %s25_s19, 128  ;;  %p781_p11 = scmp.lt.s32.totalorder %s25_s19, %s25_s19 }
  0x1b   :  { %p777_p10 = scmp.ne.s32.totalorder %s25_s19, %s776_s1  ;;  %p782_p12 = scmp.lt.s32.totalorder %s776_s1, %s776_s1 }
  0x1d   :  { %p783_p13 = por %p782_p12, %p781_p11 }
  0x1f   :  { %p784_p0 = pnand %p783_p13, %p777_p10 }
  0x21   :  { %787 = shalt.err (!%p784_p0)
}
  0x22   :  { %27 = dma.hbm_to_vmem [thread:$0]  %s998_s0, 128, %s25_s19, [#allocation3]  }
  0x23   :  { %s861_s25 = smov [#allocation7]   ;;  %s862_s27 = smov [#allocation10]  }
  0x24   :  { %s47_s26 = sshll.u32 %s861_s25, 4  ;;  %s75_s28 = sshll.u32 %s862_s27, 4  ;;  %s48_s26 = int_to_ptr.vmem [resolvable:$true] %s47_s26  ;;  %s76_s28 = int_to_ptr.vmem [resolvable:$true] %s75_s28 }
  0x25   :  { %s796_s29 = scalar_lea.vmem %s48_s26, 1024  ;;  %p801_p2 = scmp.lt.s32.totalorder %s48_s26, %s48_s26 }
  0x26   :  { %p797_p1 = scmp.ne.s32.totalorder %s48_s26, %s796_s29  ;;  %p802_p3 = scmp.lt.s32.totalorder %s796_s29, %s796_s29 }
  0x28   :  { %p803_p4 = por %p802_p3, %p801_p2 }
  0x2a   :  { %p804_p5 = pnand %p803_p4, %p797_p1 }
  0x2c   :  { %807 = shalt.err (!%p804_p5)
}
  0x2d   :  { %53 = dma.hbm_to_vmem [thread:$0]  %s1001_s3, 1024, %s48_s26, [#allocation6], %s857_s12, %s857_s12, %s858_s13  }
  0x2e   :  { %s816_s0 = scalar_lea.vmem %s76_s28, 1024  ;;  %p821_p7 = scmp.lt.s32.totalorder %s76_s28, %s76_s28 }
  0x2f   :  { %p817_p6 = scmp.ne.s32.totalorder %s76_s28, %s816_s0  ;;  %p822_p8 = scmp.lt.s32.totalorder %s816_s0, %s816_s0 }
  0x31   :  { %p823_p9 = por %p822_p8, %p821_p7 }
  0x33   :  { %p824_p10 = pnand %p823_p9, %p817_p6 }
  0x35   :  { %827 = shalt.err (!%p824_p10)
}
  0x36   :  { %81 = dma.hbm_to_vmem [thread:$0]  %s1005_s7, 1024, %s76_s28, [#allocation9], %s857_s12, %s857_s12, %s858_s13  }
  0x37   :  { %848 = dma.done.wait [#allocation3], 128  }
  0x38   :  { %849 = vsyncadd [#allocation3], 4294967168 }
  0x39   :  { %850 = dma.done.wait [#allocation6], 1536  }
  0x3a   :  { %851 = vsyncadd [#allocation6], 4294965760 }
  0x3b   :  { %852 = dma.done.wait [#allocation9], 2048  }
  0x3c   :  { %853 = vsyncadd [#allocation9], 4294965248  ;;  %v863_v0 = vmov 0.0   ;;  %vm864_vm0 = vmmov 0   ;;  %v700_v1 = vld [vmem:[#allocation5 + $0x18] sm:$0xff]   ;;  %v701_v2 = vld [vmem:[#allocation5 + $0x10] sm:$0xff]  }
  0x3d   :  { %617 = vmatprep.subr.bf16.mxu0 %v863_v0  ;;  %625 = vmatprep.mubr.msk.bf16.mxu0 %vm864_vm0, %v863_v0  ;;  %v702_v3 = vld [vmem:[#allocation5 + $0x8] sm:$0xff]   ;;  %vm141_vm1 = vcmask 523264   ;;  %v703_v4 = vld [vmem:[#allocation5] sm:$0xff]   ;;  %v100_v5 = vld [vmem:[#allocation2] sm:$0xff]  ;;  %s865_s12 = smov 127   ;;  %s866_s17 = smov [#allocation11]  }
  0x3e   :  { %629 = vmatprep.subr.bf16.mxu1 %v863_v0  ;;  %645 = vmatprep.mubr.msk.bf16.mxu1 %vm864_vm0, %v863_v0  ;;  %v101_v6 = vpack.c.bf16 %v100_v5, %v100_v5  ;;  %v704_v7 = vld [vmem:[#allocation7 + $0x38] sm:$0xff]   ;;  %v705_v8 = vld [vmem:[#allocation7 + $0x30] sm:$0xff]   ;;  %v706_v9 = vld [vmem:[#allocation7 + $0x28] sm:$0xff]   ;;  %s541_s18 = sshll.u32 %s866_s17, 4  ;;  %s542_s18 = int_to_ptr.vmem [resolvable:$true] %s541_s18 }
  0x3f   :  { %618 = vmatpush3.bf16.msra.mxu0 %v700_v1  ;;  %630 = vmatpush3.bf16.msra.mxu1 %v704_v7  ;;  %v707_v10 = vld [vmem:[#allocation7 + $0x20] sm:$0xff]   ;;  %v708_v11 = vld [vmem:[#allocation7 + $0x18] sm:$0xff]   ;;  %v709_v12 = vld [vmem:[#allocation7 + $0x10] sm:$0xff]   ;;  %p833_p12 = scmp.lt.s32.totalorder %s542_s18, %s542_s18 }
  0x40   :  { %619 = vmatprep.subr.bf16.mxu0 %v863_v0  ;;  %631 = vmatprep.subr.bf16.mxu1 %v863_v0  ;;  %v710_v13 = vld [vmem:[#allocation7 + $0x8] sm:$0xff]   ;;  %v711_v14 = vld [vmem:[#allocation7] sm:$0xff]   ;;  %v552_v15 = vld [vmem:[%s1000_s2] ss:$0 sm:$0xff] }
  0x41   :  { %v712_v25 = vld [vmem:[#allocation8 + $0x38] sm:$0xff]   ;;  %v713_v26 = vld [vmem:[#allocation8 + $0x30] sm:$0xff]   ;;  %v714_v27 = vld [vmem:[#allocation8 + $0x28] sm:$0xff]  }
  0x42   :  { %v715_v28 = vld [vmem:[#allocation8 + $0x20] sm:$0xff]   ;;  %v716_v29 = vld [vmem:[#allocation8 + $0x18] sm:$0xff]   ;;  %v717_v30 = vld [vmem:[#allocation8 + $0x10] sm:$0xff]  }
  0x43   :  { %620 = vmatpush3.bf16.msra.mxu0 %v701_v2  ;;  %632 = vmatpush3.bf16.msra.mxu1 %v705_v8  ;;  %v718_v31 = vld [vmem:[#allocation8 + $0x8] sm:$0xff]   ;;  %v719_v32 = vld [vmem:[#allocation8] sm:$0xff]   ;;  %v558_v33 = vld [vmem:[%s1002_s4] ss:$0 sm:$0xff] }
  0x44   :  { %621 = vmatprep.subr.bf16.mxu0 %v863_v0  ;;  %633 = vmatprep.subr.bf16.mxu1 %v863_v0  ;;  %v720_v43 = vld [vmem:[#allocation10 + $0x38] sm:$0xff]   ;;  %v721_v44 = vld [vmem:[#allocation10 + $0x30] sm:$0xff]   ;;  %v722_v45 = vld [vmem:[#allocation10 + $0x28] sm:$0xff]  }
  0x45   :  { %v723_v46 = vld [vmem:[#allocation10 + $0x20] sm:$0xff]   ;;  %v724_v47 = vld [vmem:[#allocation10 + $0x18] sm:$0xff]   ;;  %v725_v48 = vld [vmem:[#allocation10 + $0x10] sm:$0xff]  }
  0x46   :  { %v726_v49 = vld [vmem:[#allocation10 + $0x8] sm:$0xff]   ;;  %v727_v50 = vld [vmem:[#allocation10] sm:$0xff]   ;;  %v567_v51 = vld [vmem:[%s1004_s6] ss:$0 sm:$0xff]  ;;  %s828_s6 = scalar_lea.vmem %s542_s18, 128 }
  0x47   :  { %622 = vmatpush3.bf16.msra.mxu0 %v702_v3  ;;  %634 = vmatpush3.bf16.msra.mxu1 %v706_v9  ;;  %v576_v61 = vld [vmem:[%s1006_s8] ss:$0 sm:$0xff]  ;;  %p829_p11 = scmp.ne.s32.totalorder %s542_s18, %s828_s6  ;;  %p834_p13 = scmp.lt.s32.totalorder %s828_s6, %s828_s6 }
  0x48   :  { %623 = vmatprep.subr.bf16.mxu0 %v863_v0  ;;  %635 = vmatprep.subr.bf16.mxu1 %v863_v0 }
  0x49   :  { %p835_p0 = por %p834_p13, %p833_p12 }
  0x4b   :  { %624 = vmatpush3.bf16.msra.mxu0 %v703_v4  ;;  %636 = vmatpush3.bf16.msra.mxu1 %v707_v10  ;;  %p836_p1 = pnand %p835_p0, %p829_p11 }
  0x4c   :  { %649 = vmatprep.subr.bf16.mxu0 %v863_v0  ;;  %637 = vmatprep.subr.bf16.mxu1 %v863_v0 }
  0x4e   :  { %626 = vmatmul.mubr.msk.bf16.vlgmr.msra.gmra.mxu0 %vm141_vm1, %v101_v6 }
  0x4f   :  { %665 = vmatprep.mubr.msk.bf16.mxu0 %vm864_vm0, %v863_v0  ;;  %638 = vmatpush3.bf16.msra.mxu1 %v708_v11 }
  0x50   :  { %639 = vmatprep.subr.bf16.mxu1 %v863_v0  ;;  %650 = vmatpush3.bf16.msra.mxu0 %v712_v25 }
  0x51   :  { %651 = vmatprep.subr.bf16.mxu0 %v863_v0 }
  0x53   :  { %640 = vmatpush3.bf16.msra.mxu1 %v709_v12 }
  0x54   :  { %641 = vmatprep.subr.bf16.mxu1 %v863_v0  ;;  %652 = vmatpush3.bf16.msra.mxu0 %v713_v26 }
  0x55   :  { %653 = vmatprep.subr.bf16.mxu0 %v863_v0 }
  0x57   :  { %642 = vmatpush3.bf16.msra.mxu1 %v710_v13 }
  0x58   :  { %643 = vmatprep.subr.bf16.mxu1 %v863_v0  ;;  %654 = vmatpush3.bf16.msra.mxu0 %v714_v27 }
  0x59   :  { %655 = vmatprep.subr.bf16.mxu0 %v863_v0 }
  0x5b   :  { %644 = vmatpush3.bf16.msra.mxu1 %v711_v14 }
  0x5c   :  { %669 = vmatprep.subr.bf16.mxu1 %v863_v0  ;;  %656 = vmatpush3.bf16.msra.mxu0 %v715_v28 }
  0x5d   :  { %657 = vmatprep.subr.bf16.mxu0 %v863_v0 }
  0x60   :  { %658 = vmatpush3.bf16.msra.mxu0 %v716_v29 }
  0x61   :  { %659 = vmatprep.subr.bf16.mxu0 %v863_v0 }
  0x64   :  { %660 = vmatpush3.bf16.msra.mxu0 %v717_v30 }
  0x65   :  { %661 = vmatprep.subr.bf16.mxu0 %v863_v0 }
  0x68   :  { %662 = vmatpush3.bf16.msra.mxu0 %v718_v31 }
  0x69   :  { %663 = vmatprep.subr.bf16.mxu0 %v863_v0 }
  0x6c   :  { %664 = vmatpush3.bf16.msra.mxu0 %v719_v32 }
 0x10e   :  { %v179_v16 = vpop.f32.mrf.mxu0 }
 0x10f   :  { %v180_v17 = vadd.f32 %v552_v15, %v179_v16 }
 0x110   :  { %v627_v18 = vpop.f32.mrf.mxu0 }
 0x111   :  { %v185_v19 = vmax.f32 %v180_v17, 0.0 }
 0x112   :  { %v182_v20 = vpop.f32.mrf.mxu0 }
 0x113   :  { %186 = vrot.lane.b32.xlu0 %v185_v19, %s865_s12 }
 0x114   :  { %v628_v21 = vpop.f32.mrf.mxu0 }
 0x185   :  { %v187_v22 = vpop.permute.xlu0 %186 }
 0x186   :  { %v188_v23 = vmax.f32 %v185_v19, %v187_v22 }
 0x188   :  { %v189_v24 = vpack.c.bf16 %v188_v23, %v188_v23 }
 0x18a   :  { %646 = vmatmul.mubr.bf16.vlgmr.msra.gmra.mxu1 %v189_v24 }
 0x18b   :  { %685 = vmatprep.mubr.msk.bf16.mxu1 %vm864_vm0, %v863_v0  ;;  %670 = vmatpush3.bf16.msra.mxu1 %v720_v43 }
 0x18c   :  { %671 = vmatprep.subr.bf16.mxu1 %v863_v0 }
 0x18f   :  { %672 = vmatpush3.bf16.msra.mxu1 %v721_v44 }
 0x190   :  { %673 = vmatprep.subr.bf16.mxu1 %v863_v0 }
 0x193   :  { %674 = vmatpush3.bf16.msra.mxu1 %v722_v45 }
 0x194   :  { %675 = vmatprep.subr.bf16.mxu1 %v863_v0 }
 0x197   :  { %676 = vmatpush3.bf16.msra.mxu1 %v723_v46 }
 0x198   :  { %677 = vmatprep.subr.bf16.mxu1 %v863_v0 }
 0x19b   :  { %678 = vmatpush3.bf16.msra.mxu1 %v724_v47 }
 0x19c   :  { %679 = vmatprep.subr.bf16.mxu1 %v863_v0 }
 0x19f   :  { %680 = vmatpush3.bf16.msra.mxu1 %v725_v48 }
 0x1a0   :  { %681 = vmatprep.subr.bf16.mxu1 %v863_v0 }
 0x1a3   :  { %682 = vmatpush3.bf16.msra.mxu1 %v726_v49 }
 0x1a4   :  { %683 = vmatprep.subr.bf16.mxu1 %v863_v0 }
 0x1a7   :  { %684 = vmatpush3.bf16.msra.mxu1 %v727_v50 }
 0x24a   :  { %v295_v34 = vpop.f32.mrf.mxu1 }
 0x24b   :  { %v296_v35 = vadd.f32 %v558_v33, %v295_v34 }
 0x24c   :  { %v647_v36 = vpop.f32.mrf.mxu1 }
 0x24d   :  { %v301_v37 = vmax.f32 %v296_v35, 0.0 }
 0x24e   :  { %v298_v38 = vpop.f32.mrf.mxu1 }
 0x24f   :  { %302 = vrot.lane.b32.xlu0 %v301_v37, %s865_s12 }
 0x250   :  { %v648_v39 = vpop.f32.mrf.mxu1 }
 0x2c1   :  { %v303_v40 = vpop.permute.xlu0 %302 }
 0x2c2   :  { %v304_v41 = vmax.f32 %v301_v37, %v303_v40 }
 0x2c4   :  { %v305_v42 = vpack.c.bf16 %v304_v41, %v304_v41 }
 0x2c6   :  { %666 = vmatmul.mubr.bf16.vlgmr.msra.gmra.mxu0 %v305_v42 }
 0x386   :  { %v411_v52 = vpop.f32.mrf.mxu0 }
 0x387   :  { %v412_v53 = vadd.f32 %v567_v51, %v411_v52 }
 0x388   :  { %v667_v54 = vpop.f32.mrf.mxu0 }
 0x389   :  { %v417_v55 = vmax.f32 %v412_v53, 0.0 }
 0x38a   :  { %v414_v56 = vpop.f32.mrf.mxu0 }
 0x38b   :  { %418 = vrot.lane.b32.xlu1 %v417_v55, %s865_s12 }
 0x38c   :  { %v668_v57 = vpop.f32.mrf.mxu0 }
 0x3fd   :  { %v419_v58 = vpop.permute.xlu1 %418 }
 0x3fe   :  { %v420_v59 = vmax.f32 %v417_v55, %v419_v58 }
 0x400   :  { %v421_v60 = vpack.c.bf16 %v420_v59, %v420_v59 }
 0x402   :  { %686 = vmatmul.mubr.bf16.vlgmr.msra.gmra.mxu1 %v421_v60 }
 0x4c2   :  { %v527_v62 = vpop.f32.mrf.mxu1 }
 0x4c3   :  { %v528_v63 = vadd.f32 %v576_v61, %v527_v62 }
 0x4c4   :  { %v687_v0 = vpop.f32.mrf.mxu1 }
 0x4c5   :  { %v533_v1 = vmax.f32 %v528_v63, 0.0 }
 0x4c6   :  { %v530_v2 = vpop.f32.mrf.mxu1 }
 0x4c7   :  { %534 = vst [vmem:[#allocation11] sm:$0xff] %v533_v1 }
 0x4c8   :  { %v688_v3 = vpop.f32.mrf.mxu1 }
 0x4c9   :  { %839 = shalt.err (!%p836_p1)
}
 0x4ca   :  { %544 = dma.vmem_to_hbm [thread:$0]  %s542_s18, 128, %s1007_s9, [#allocation4]  }
 0x4cb   :  { %854 = dma.done.wait [#allocation4], 128  }
 0x4cc   :  { %855 = vsyncadd [#allocation4], 4294967168 }
 0x4cd   :  { %548 = vsyncpa [#allocation3], 1 }
 0x4ce   :  { %549 = vsyncpa [#allocation6], 1 }
 0x4cf   :  { %550 = vsyncpa [#allocation9], 1 }
 0x4d0   :  { %551 = vsyncpa [#allocation4], 1 }

</bundles_post_ra>
